<compile_context>
chip_gen: v7x
topology: tpu7x:2x2x1
jax: 0.10.0
libtpu: 0.0.40
codegen_flags: <defaults>
</compile_context>

<pallas_src>
import functools

import jax
import jax.numpy as jnp
from jax.experimental import pallas as pl
from jax.experimental.pallas import tpu as pltpu


def _round_up(x, m):
    return ((x + m - 1) // m) * m


def _triplet_loss_kernel(a_ref, p_ref, n_ref, out_ref, acc_ref, *,
                         margin, batch, tile_b):
    i = pl.program_id(0)

    @pl.when(i == 0)
    def _():
        acc_ref[...] = jnp.zeros_like(acc_ref)

    a = a_ref[...].astype(jnp.float32)
    p = p_ref[...].astype(jnp.float32)
    n = n_ref[...].astype(jnp.float32)

    dp = a - p
    dn = a - n
    # Row-wise squared L2 distances, kept 2-D: (TILE_B, 1)
    sq_pos = jnp.sum(dp * dp, axis=1, keepdims=True)
    sq_neg = jnp.sum(dn * dn, axis=1, keepdims=True)
    losses = jnp.maximum(jnp.sqrt(sq_pos) - jnp.sqrt(sq_neg) + margin, 0.0)

    # Mask batch-padding rows (they carry all-zero data -> would add `margin`)
    row = i * tile_b + jax.lax.broadcasted_iota(jnp.int32, (tile_b, 1), 0)
    losses = jnp.where(row < batch, losses, 0.0)

    acc_ref[...] += jnp.sum(losses, axis=0, keepdims=True)

    @pl.when(i == pl.num_programs(0) - 1)
    def _():
        out_ref[...] = acc_ref[...] * (1.0 / batch)


def triplet_loss(anchor, positive, negative, margin=1.0, *,
                 tile_bytes=2 * 1024 * 1024):
    """Pallas TPU implementation of TripletLoss.forward.

    anchor / positive / negative: (B, D) float arrays. Returns scalar f32.
    """
    assert anchor.shape == positive.shape == negative.shape
    assert anchor.ndim == 2
    B, D = anchor.shape

    # Lane-dense feature dim (multiple of 128); zero padding preserves sums.
    d_pad = _round_up(max(D, 1), 128)

    # Batch tile sized for ~tile_bytes of f32 per input tile, multiple of 8,
    # capped at 1024 and at the (8-aligned) batch itself.
    bytes_per_row = d_pad * 4
    tile_b = max(8, min(1024, (tile_bytes // bytes_per_row) // 8 * 8))
    tile_b = min(tile_b, _round_up(B, 8))
    b_pad = _round_up(B, tile_b)

    def _pad(x):
        return jnp.pad(x, ((0, b_pad - B), (0, d_pad - D)))

    a_p, p_p, n_p = _pad(anchor), _pad(positive), _pad(negative)

    kernel = functools.partial(
        _triplet_loss_kernel,
        margin=float(margin), batch=int(B), tile_b=int(tile_b))

    grid = (b_pad // tile_b,)
    in_spec = pl.BlockSpec((tile_b, d_pad), lambda i: (i, 0))

    out = pl.pallas_call(
        kernel,
        out_shape=jax.ShapeDtypeStruct((1, 1), jnp.float32),
        grid=grid,
        in_specs=[in_spec, in_spec, in_spec],
        out_specs=pl.BlockSpec((1, 1), lambda i: (0, 0)),
        scratch_shapes=[pltpu.VMEM((1, 1), jnp.float32)],
        compiler_params=pltpu.CompilerParams(
            dimension_semantics=("arbitrary",),
            vmem_limit_bytes=32 * 1024 * 1024),
    )(a_p, p_p, n_p)
    return out[0, 0]


def _reference(anchor, positive, negative, margin=1.0):
    dp = jnp.sqrt(jnp.sum((anchor - positive) ** 2, axis=1))
    dn = jnp.sqrt(jnp.sum((anchor - negative) ** 2, axis=1))
    return jnp.mean(jnp.maximum(dp - dn + margin, 0.0))


if __name__ == "__main__":
    key = jax.random.PRNGKey(0)
    k_a, k_p, k_n = jax.random.split(key, 3)

    # Small shapes consistent with an embedding-triplet usage.
    B, D = 8, 32
    anchor = jax.random.normal(k_a, (B, D), dtype=jnp.float32)
    positive = jax.random.normal(k_p, (B, D), dtype=jnp.float32)
    negative = jax.random.normal(k_n, (B, D), dtype=jnp.float32)

    loss = triplet_loss(anchor, positive, negative, margin=1.0)
    jax.block_until_ready(loss)
    ref = _reference(anchor, positive, negative, margin=1.0)
    assert jnp.allclose(loss, ref, rtol=1e-4, atol=1e-4), (loss, ref)

    # Exercise the batch grid, accumulator carry and padding/masking paths.
    B2, D2 = 300, 192
    a2 = jax.random.normal(k_a, (B2, D2), dtype=jnp.float32)
    p2 = jax.random.normal(k_p, (B2, D2), dtype=jnp.float32)
    n2 = jax.random.normal(k_n, (B2, D2), dtype=jnp.float32)
    loss2 = triplet_loss(a2, p2, n2, margin=0.5, tile_bytes=64 * 1024)
    jax.block_until_ready(loss2)
    ref2 = _reference(a2, p2, n2, margin=0.5)
    assert jnp.allclose(loss2, ref2, rtol=1e-4, atol=1e-4), (loss2, ref2)

    print("KERNEL_OK")
</pallas_src>

<mosaic_0001>
module attributes {stable_mosaic.version = 11 : i64} {
  func.func @_triplet_loss_kernel(%arg0: i32, %arg1: memref<8x128xf32, #tpu.memory_space<vmem>>, %arg2: memref<8x128xf32, #tpu.memory_space<vmem>>, %arg3: memref<8x128xf32, #tpu.memory_space<vmem>>, %arg4: memref<1x1xf32, #tpu.memory_space<vmem>>, %arg5: memref<1x1xf32, #tpu.memory_space<vmem>>) attributes {dimension_semantics = [#tpu.dimension_semantics<arbitrary>], iteration_bounds = array<i64: 1>, scalar_prefetch = 0 : i64, scratch_operands = 1 : i64, tpu.core_type = #tpu.core_type<tc>, window_params = [{transform_indices = @transform_0, window_bounds = array<i64: 8, 128>}, {transform_indices = @transform_1, window_bounds = array<i64: 8, 128>}, {transform_indices = @transform_2, window_bounds = array<i64: 8, 128>}, {pipeline_mode = #tpu.pipeline_mode<synchronous>, transform_indices = @transform_3, window_bounds = array<i64: 1, 1>}]} {
    %c0_i32 = arith.constant 0 : i32
    %0 = arith.cmpi eq, %arg0, %c0_i32 : i32
    %1 = arith.extui %0 : i1 to i32
    %c0_i32_0 = arith.constant 0 : i32
    %2 = arith.cmpi ne, %1, %c0_i32_0 : i32
    scf.if %2 {
      %cst_18 = arith.constant 0.000000e+00 : f32
      %37 = vector.broadcast %cst_18 : f32 to vector<1x1xf32>
      %c0_19 = arith.constant 0 : index
      %c0_20 = arith.constant 0 : index
      %38 = vector.load %arg5[%c0_19, %c0_20] : memref<1x1xf32, #tpu.memory_space<vmem>>, vector<1x1xf32>
      tpu.vector_store %arg5[%c0_19, %c0_20], %37 {strides = array<i32>} : memref<1x1xf32, #tpu.memory_space<vmem>>, vector<1x1xf32>,
    } else {
    }
    %c0 = arith.constant 0 : index
    %c0_1 = arith.constant 0 : index
    %3 = vector.load %arg1[%c0, %c0_1] : memref<8x128xf32, #tpu.memory_space<vmem>>, vector<8x128xf32>
    %c0_2 = arith.constant 0 : index
    %c0_3 = arith.constant 0 : index
    %4 = vector.load %arg2[%c0_2, %c0_3] : memref<8x128xf32, #tpu.memory_space<vmem>>, vector<8x128xf32>
    %c0_4 = arith.constant 0 : index
    %c0_5 = arith.constant 0 : index
    %5 = vector.load %arg3[%c0_4, %c0_5] : memref<8x128xf32, #tpu.memory_space<vmem>>, vector<8x128xf32>
    %6 = arith.subf %3, %4 : vector<8x128xf32>
    %7 = arith.subf %3, %5 : vector<8x128xf32>
    %8 = arith.mulf %6, %6 : vector<8x128xf32>
    %cst = arith.constant dense<0.000000e+00> : vector<8xf32>
    %9 = vector.multi_reduction <add>, %8, %cst [1] : vector<8x128xf32> to vector<8xf32>
    %10 = vector.shape_cast %9 : vector<8xf32> to vector<8x1xf32>
    %11 = arith.mulf %7, %7 : vector<8x128xf32>
    %cst_6 = arith.constant dense<0.000000e+00> : vector<8xf32>
    %12 = vector.multi_reduction <add>, %11, %cst_6 [1] : vector<8x128xf32> to vector<8xf32>
    %13 = vector.shape_cast %12 : vector<8xf32> to vector<8x1xf32>
    %14 = math.sqrt %10 : vector<8x1xf32>
    %15 = math.sqrt %13 : vector<8x1xf32>
    %16 = arith.subf %14, %15 : vector<8x1xf32>
    %cst_7 = arith.constant 1.000000e+00 : f32
    %17 = vector.broadcast %cst_7 : f32 to vector<8x1xf32>
    %18 = arith.addf %16, %17 : vector<8x1xf32>
    %cst_8 = arith.constant 0.000000e+00 : f32
    %19 = vector.broadcast %cst_8 : f32 to vector<8x1xf32>
    %20 = arith.maximumf %18, %19 : vector<8x1xf32>
    %c8_i32 = arith.constant 8 : i32
    %21 = arith.muli %arg0, %c8_i32 : i32
    %22 = tpu.iota {dimensions = array<i32: 0>} : vector<8x1xi32>
    %23 = vector.broadcast %21 : i32 to vector<8x1xi32>
    %24 = arith.addi %23, %22 : vector<8x1xi32>
    %c8_i32_9 = arith.constant 8 : i32
    %25 = vector.broadcast %c8_i32_9 : i32 to vector<8x1xi32>
    %26 = arith.cmpi slt, %24, %25 : vector<8x1xi32>
    %cst_10 = arith.constant 0.000000e+00 : f32
    %27 = vector.broadcast %cst_10 : f32 to vector<8x1xf32>
    %28 = arith.select %26, %20, %27 : vector<8x1xi1>, vector<8x1xf32>
    %c0_11 = arith.constant 0 : index
    %c0_12 = arith.constant 0 : index
    %29 = vector.load %arg5[%c0_11, %c0_12] : memref<1x1xf32, #tpu.memory_space<vmem>>, vector<1x1xf32>
    %cst_13 = arith.constant dense<0.000000e+00> : vector<1xf32>
    %30 = vector.multi_reduction <add>, %28, %cst_13 [0] : vector<8x1xf32> to vector<1xf32>
    %31 = vector.shape_cast %30 : vector<1xf32> to vector<1x1xf32>
    %32 = arith.addf %29, %31 : vector<1x1xf32>
    %c0_14 = arith.constant 0 : index
    %c0_15 = arith.constant 0 : index
    %33 = vector.load %arg5[%c0_14, %c0_15] : memref<1x1xf32, #tpu.memory_space<vmem>>, vector<1x1xf32>
    tpu.vector_store %arg5[%c0_14, %c0_15], %32 {strides = array<i32>} : memref<1x1xf32, #tpu.memory_space<vmem>>, vector<1x1xf32>,
    %c0_i32_16 = arith.constant 0 : i32
    %34 = arith.cmpi eq, %arg0, %c0_i32_16 : i32
    %35 = arith.extui %34 : i1 to i32
    %c0_i32_17 = arith.constant 0 : i32
    %36 = arith.cmpi ne, %35, %c0_i32_17 : i32
    scf.if %36 {
      %c0_18 = arith.constant 0 : index
      %c0_19 = arith.constant 0 : index
      %37 = vector.load %arg5[%c0_18, %c0_19] : memref<1x1xf32, #tpu.memory_space<vmem>>, vector<1x1xf32>
      %cst_20 = arith.constant 1.250000e-01 : f32
      %38 = vector.broadcast %cst_20 : f32 to vector<1x1xf32>
      %39 = arith.mulf %37, %38 : vector<1x1xf32>
      %c0_21 = arith.constant 0 : index
      %c0_22 = arith.constant 0 : index
      %40 = vector.load %arg4[%c0_21, %c0_22] : memref<1x1xf32, #tpu.memory_space<vmem>>, vector<1x1xf32>
      tpu.vector_store %arg4[%c0_21, %c0_22], %39 {strides = array<i32>} : memref<1x1xf32, #tpu.memory_space<vmem>>, vector<1x1xf32>,
    } else {
    }
    return
  }
  func.func @transform_0(%arg0: i32) -> (i32, i32) {
    %c0_i32 = arith.constant 0 : i32
    %c0_i32_0 = arith.constant 0 : i32
    return %arg0, %c0_i32 : i32, i32
  }
  func.func @transform_1(%arg0: i32) -> (i32, i32) {
    %c0_i32 = arith.constant 0 : i32
    %c0_i32_0 = arith.constant 0 : i32
    return %arg0, %c0_i32 : i32, i32
  }
  func.func @transform_2(%arg0: i32) -> (i32, i32) {
    %c0_i32 = arith.constant 0 : i32
    %c0_i32_0 = arith.constant 0 : i32
    return %arg0, %c0_i32 : i32, i32
  }
  func.func @transform_3(%arg0: i32) -> (i32, i32) {
    %c0_i32 = arith.constant 0 : i32
    %c0_i32_0 = arith.constant 0 : i32
    %c0_i32_1 = arith.constant 0 : i32
    return %c0_i32, %c0_i32_0 : i32, i32
  }
}

</mosaic_0001>

<bundles_post_ra>
// kernel: tpu_custom_call.1
= control target key start
LH: loop header
LB: loop body
LE: loop exit
PB: predicated region body
PF: predicated region fallthrough
CT: control target
= control target key end

     0   :  { %8 = vsyncpa [#allocation4], 0  ;;  %s302_s0 = inlined_call_operand.hbm [shape: f32[8,128], index: 0, kind: input, shape index: {}]   ;;  %s303_s1 = inlined_call_operand.hbm [shape: f32[8,128], index: 1, kind: input, shape index: {}]   ;;  %s304_s2 = inlined_call_operand.hbm [shape: f32[8,128], index: 2, kind: input, shape index: {}]   ;;  %s305_s3 = inlined_call_operand.hbm [shape: f32[1,1], index: 3, kind: output, shape index: {}]  }
   0x1   :  { %9 = vsyncpa [#allocation7], 0 }
   0x2   :  { %10 = vsyncpa [#allocation5], 0  ;;  %s226_s12 = smov [#allocation6]   ;;  %s227_s14 = smov [#allocation3]  }
   0x3   :  { %s27_s13 = sshll.u32 %s226_s12, 4  ;;  %s17_s15 = sshll.u32 %s227_s14, 4  ;;  %s28_s13 = int_to_ptr.vmem [resolvable:$true] %s27_s13  ;;  %s18_s15 = int_to_ptr.vmem [resolvable:$true] %s17_s15 }
   0x4   :  { %s132_s18 = scalar_lea.hbm %s303_s1, 128 }
   0x5   :  { %p133_p0 = scmp.ne.s32.totalorder %s303_s1, %s132_s18  ;;  %p136_p1 = scmp.lt.u32.totalorder %s132_s18, %s303_s1 }
   0x7   :  { %p138_p2 = pnand %p136_p1, %p133_p0 }
   0x9   :  { %141 = shalt.err (!%p138_p2)
}
   0xa   :  { %s142_s23 = scalar_lea.vmem %s28_s13, 128  ;;  %p147_p4 = scmp.lt.s32.totalorder %s28_s13, %s28_s13 }
   0xb   :  { %p143_p3 = scmp.ne.s32.totalorder %s28_s13, %s142_s23  ;;  %p148_p5 = scmp.lt.s32.totalorder %s142_s23, %s142_s23 }
   0xd   :  { %p149_p6 = por %p148_p5, %p147_p4 }
   0xf   :  { %p150_p7 = pnand %p149_p6, %p143_p3 }
  0x11   :  { %153 = shalt.err (!%p150_p7)
}
  0x12   :  { %30 = dma.hbm_to_vmem [thread:$0]  %s303_s1, 128, %s28_s13, [#allocation7]  }
  0x13   :  { %s154_s28 = scalar_lea.hbm %s302_s0, 128 }
  0x14   :  { %p155_p8 = scmp.ne.s32.totalorder %s302_s0, %s154_s28  ;;  %p158_p9 = scmp.lt.u32.totalorder %s154_s28, %s302_s0 }
  0x16   :  { %p160_p10 = pnand %p158_p9, %p155_p8 }
  0x18   :  { %163 = shalt.err (!%p160_p10)
}
  0x19   :  { %s164_s6 = scalar_lea.vmem %s18_s15, 128  ;;  %p169_p12 = scmp.lt.s32.totalorder %s18_s15, %s18_s15 }
  0x1a   :  { %p165_p11 = scmp.ne.s32.totalorder %s18_s15, %s164_s6  ;;  %p170_p13 = scmp.lt.s32.totalorder %s164_s6, %s164_s6 }
  0x1c   :  { %p171_p0 = por %p170_p13, %p169_p12 }
  0x1e   :  { %p172_p1 = pnand %p171_p0, %p165_p11 }
  0x20   :  { %175 = shalt.err (!%p172_p1)
}
  0x21   :  { %20 = dma.hbm_to_vmem [thread:$0]  %s302_s0, 128, %s18_s15, [#allocation4]  }
  0x22   :  { %s228_s8 = smov [#allocation8]   ;;  %s176_s12 = scalar_lea.hbm %s304_s2, 128 }
  0x23   :  { %s37_s9 = sshll.u32 %s228_s8, 4  ;;  %p177_p2 = scmp.ne.s32.totalorder %s304_s2, %s176_s12  ;;  %s38_s9 = int_to_ptr.vmem [resolvable:$true] %s37_s9 }
  0x24   :  { %p180_p3 = scmp.lt.u32.totalorder %s176_s12, %s304_s2 }
  0x26   :  { %p182_p4 = pnand %p180_p3, %p177_p2 }
  0x28   :  { %185 = shalt.err (!%p182_p4)
}
  0x29   :  { %s186_s18 = scalar_lea.vmem %s38_s9, 128  ;;  %p191_p6 = scmp.lt.s32.totalorder %s38_s9, %s38_s9 }
  0x2a   :  { %p187_p5 = scmp.ne.s32.totalorder %s38_s9, %s186_s18  ;;  %p192_p7 = scmp.lt.s32.totalorder %s186_s18, %s186_s18 }
  0x2c   :  { %p193_p8 = por %p192_p7, %p191_p6 }
  0x2e   :  { %p194_p9 = pnand %p193_p8, %p187_p5 }
  0x30   :  { %197 = shalt.err (!%p194_p9)
}
  0x31   :  { %40 = dma.hbm_to_vmem [thread:$0]  %s304_s2, 128, %s38_s9, [#allocation7]  }
  0x32   :  { %220 = dma.done.wait [#allocation4], 128  }
  0x33   :  { %221 = vsyncadd [#allocation4], 4294967168 }
  0x34   :  { %222 = dma.done.wait [#allocation7], 256  }
  0x35   :  { %223 = vsyncadd [#allocation7], 4294967040  ;;  %v56_v0 = vld [vmem:[#allocation3] sm:$0xff]  ;;  %v57_v1 = vld [vmem:[#allocation6] sm:$0xff]  ;;  %vm54_vm0 = vcmask 0   ;;  %v229_v7 = vmov 0.0  }
  0x36   :  { %v58_v2 = vld [vmem:[#allocation8] sm:$0xff]  ;;  %v59_v3 = vsub.f32 %v56_v0, %v57_v1  ;;  %55 = vst.msk [vmem:[#allocation2] sm:$0x1] %vm54_vm0, %v229_v7  ;;  %s230_s2 = smov [#allocation9]  }
  0x37   :  { %v60_v4 = vsub.f32 %v56_v0, %v58_v2  ;;  %s113_s19 = sshll.u32 %s230_s2, 4  ;;  %s114_s19 = int_to_ptr.vmem [resolvable:$true] %s113_s19 }
  0x38   :  { %v61_v5 = vmul.f32 %v59_v3, %v59_v3  ;;  %s198_s20 = scalar_lea.vmem %s114_s19, 16  ;;  %s202_s21 = scalar_lea.vmem %s114_s19, 32 }
  0x39   :  { %v64_v6 = vmul.f32 %v60_v4, %v60_v4  ;;  %p199_p10 = scmp.ne.s32.totalorder %s114_s19, %s198_s20  ;;  %p203_p11 = scmp.lt.s32.totalorder %s114_s19, %s114_s19 }
  0x3a   :  { %62 = vadd.xlane.f32.xlu0 %v61_v5  ;;  %p204_p12 = scmp.lt.s32.totalorder %s202_s21, %s198_s20 }
  0x3c   :  { %p205_p13 = por %p204_p12, %p203_p11 }
  0x3d   :  { %v91_v28 = vld [vmem:[#allocation2] sm:$0x1] }
  0x3e   :  { %65 = vadd.xlane.f32.xlu0 %v64_v6  ;;  %p206_p0 = pnand %p205_p13, %p199_p10 }
  0xc7   :  { %v63_v8 = vpop.xlane.xlu0 %62 }
  0xc8   :  { %128 = vrsqrt.f32 %v63_v8  ;;  %vm69_vm1 = vcmp.eq.f32.partialorder %v63_v8, inf  ;;  %v72_v15 = vand.u32 2147483648, %v63_v8  ;;  %vm71_vm3 = vcmp.eq.f32.partialorder %v63_v8, 0.0 }
  0xcb   :  { %v66_v9 = vpop.xlane.xlu0 %65 }
  0xcc   :  { %130 = vrsqrt.f32 %v66_v9  ;;  %vm76_vm2 = vcmp.eq.f32.partialorder %v66_v9, inf  ;;  %v79_v16 = vand.u32 2147483648, %v66_v9  ;;  %vm78_vm4 = vcmp.eq.f32.partialorder %v66_v9, 0.0 }
  0xd2   :  { %v129_v10 = vpop.eup %128 }
  0xd3   :  { %v68_v11 = vmul.f32 %v129_v10, %v63_v8 }
  0xd5   :  { %v70_v13 = vsel %vm69_vm1, %v63_v8, %v68_v11 }
  0xd6   :  { %v131_v12 = vpop.eup %130  ;;  %v73_v18 = vsel %vm71_vm3, %v72_v15, %v70_v13 }
  0xd7   :  { %v75_v14 = vmul.f32 %v131_v12, %v66_v9 }
  0xd9   :  { %v77_v17 = vsel %vm76_vm2, %v66_v9, %v75_v14 }
  0xda   :  { %v80_v19 = vsel %vm78_vm4, %v79_v16, %v77_v17 }
  0xdb   :  { %v81_v20 = vsub.f32 %v73_v18, %v80_v19 }
  0xdd   :  { %v82_v21 = vadd.f32 1.0, %v81_v20 }
  0xdf   :  { %v83_v22 = vmax.f32 %v82_v21, 0.0 }
  0xe1   :  { %v92_v23 = vrot.slane %v83_v22, 4 }
  0xe3   :  { %v93_v24 = vadd.f32 %v92_v23, %v83_v22 }
  0xe5   :  { %v94_v25 = vrot.slane %v93_v24, 2 }
  0xe7   :  { %v95_v26 = vadd.f32 %v94_v25, %v93_v24 }
  0xe9   :  { %v96_v27 = vrot.slane %v95_v26, 1 }
  0xeb   :  { %v97_v29 = vadd.f32 %v96_v27, %v95_v26 }
  0xed   :  { %v98_v30 = vadd.f32 %v97_v29, %v91_v28 }
  0xef   :  { %100 = vst.msk [vmem:[#allocation2] sm:$0x1] %vm54_vm0, %v98_v30 }
  0xf6   :  { %v104_v31 = vld [vmem:[#allocation2] sm:$0x1] }
  0xf7   :  { %v105_v32 = vmul.f32 0.125, %v104_v31 }
  0xf9   :  { %106 = vst.msk [vmem:[#allocation9] sm:$0x1] %vm54_vm0, %v105_v32 }
  0xfa   :  { %209 = shalt.err (!%p206_p0)
}
  0xfb   :  { %s210_s24 = scalar_lea.hbm %s305_s3, 16 }
  0xfc   :  { %p211_p1 = scmp.ne.s32.totalorder %s305_s3, %s210_s24  ;;  %p214_p2 = scmp.lt.u32.totalorder %s210_s24, %s305_s3 }
  0xfe   :  { %p216_p3 = pnand %p214_p2, %p211_p1 }
 0x100   :  { %219 = shalt.err (!%p216_p3)
}
 0x101   :  { %116 = dma.vmem_to_hbm [thread:$0]  %s114_s19, 16, %s305_s3, [#allocation5]  }
 0x102   :  { %224 = dma.done.wait [#allocation5], 16  }
 0x103   :  { %225 = vsyncadd [#allocation5], 4294967280 }
 0x104   :  { %120 = vsyncpa [#allocation4], 1 }
 0x105   :  { %121 = vsyncpa [#allocation7], 1 }
 0x106   :  { %122 = vsyncpa [#allocation5], 1 }

</bundles_post_ra>
